<compile_context>
chip_gen: v7x
topology: tpu7x:2x2x1
jax: 0.10.0
libtpu: 0.0.40
codegen_flags: <defaults>
</compile_context>

<pallas_src>
import functools

import jax
import jax.numpy as jnp
from jax import lax
from jax.experimental import pallas as pl
from jax.experimental.pallas import tpu as pltpu

_LANE = 128
_REG_ROWS_TAPS = 256   # target rows per register block in the tap-loop kernel
_REG_ROWS_MM = 512     # target rows per register block in the im2col kernel


def _round_up(x, m):
    return (x + m - 1) // m * m


def _vmem_capacity_bytes():
    """Per-core VMEM capacity; conservative 64 MiB fallback (v7x size)."""
    try:
        cap = int(pltpu.get_tpu_info().vmem_capacity_bytes)
        if cap > 0:
            return cap
    except Exception:
        pass
    return 64 * 1024 * 1024


# ----------------------------------------------------------------------------
# Path A: im2col matmul kernel for tiny channel counts (K*K*C1 <= 128).
# ----------------------------------------------------------------------------
def _matmul_bn_silu_kernel(p_ref, w_ref, shift_ref, o_ref, *, tm):
    """One (batch, M-tile) per grid step.

    p_ref:     (1, tm, CKP)  im2col patches (compute dtype), CKP = K*K*C1 -> 128
    w_ref:     (CKP, C2P)    BN-scale-folded conv weights (compute dtype)
    shift_ref: (1, C2P)      folded BN shift (f32)
    o_ref:     (1, tm, C2P)  output tile (compute dtype, lane-dense)
    """
    shift = shift_ref[...]
    r0 = 0
    while r0 < tm:                       # static register-row blocking
        rc = min(_REG_ROWS_MM, tm - r0)
        y = jnp.dot(p_ref[0, pl.ds(r0, rc), :], w_ref[...],
                    preferred_element_type=jnp.float32)
        y = y + shift
        y = y * pl.reciprocal(1.0 + jnp.exp(-y), approx=True)   # SiLU
        o_ref[0, pl.ds(r0, rc), :] = y.astype(o_ref.dtype)      # single write
        r0 += rc


# ----------------------------------------------------------------------------
# Path B: general tap-loop kernel with in-kernel halo DMA.
# ----------------------------------------------------------------------------
def _conv_tap_bn_silu_kernel(x_hbm, w_ref, shift_ref, o_ref, xbuf, dma_sem,
                             *, th, out_w, k, halo, rows_per_block):
    """One (batch, H-tile) per grid step.

    x_hbm:     (N, Hp, Wp, C1P) activation in HBM (memory_space=pl.ANY)
    w_ref:     (K, K, C1P, C2P) BN-scale-folded weights (VMEM, grid-invariant)
    shift_ref: (1, C2P)         folded BN shift (f32)
    o_ref:     (1, th, out_w, C2P) output tile (compute dtype)
    xbuf:      (2, th + halo, Wp, C1P) VMEM double buffer for the halo window
    dma_sem:   (2,) DMA semaphores
    """
    n = pl.program_id(0)
    h = pl.program_id(1)
    nh = pl.num_programs(1)
    slot = lax.rem(h, 2)

    def _fetch(row_block, s):
        pltpu.make_async_copy(
            x_hbm.at[n, pl.ds(row_block * th, th + halo)],
            xbuf.at[s],
            dma_sem.at[s],
        ).start()

    # Prime the pipeline at the start of each batch row.  h is the sequential
    # ("arbitrary") grid axis, so cross-step DMA state is valid per n even with
    # megacore sharding of the "parallel" N axis.
    @pl.when(h == 0)
    def _():
        _fetch(0, 0)

    # Prefetch the next H-tile's halo window while computing the current one.
    @pl.when(h + 1 < nh)
    def _():
        _fetch(h + 1, 1 - slot)

    pltpu.make_async_copy(
        x_hbm.at[n, pl.ds(h * th, th + halo)],
        xbuf.at[slot],
        dma_sem.at[slot],
    ).wait()

    xw = xbuf.at[slot]
    shift = shift_ref[...]

    # K*K shifted (rows*W, C1P) x (C1P, C2P) MXU matmuls, accumulated in SSA
    # values; each output element is written exactly once.  Row chunks keep the
    # f32 accumulator vreg-sized regardless of tile_h.
    r0 = 0
    while r0 < th:                       # static register-row blocking
        rc = min(rows_per_block, th - r0)
        acc = None
        for kh in range(k):
            for kw in range(k):
                patch = xw[pl.ds(r0 + kh, rc), pl.ds(kw, out_w), :]
                # (rc, W, C1P) -> (rc*W, C1P): free vreg re-labeling when W%8==0.
                patch = patch.reshape(rc * out_w, patch.shape[-1])
                part = jnp.dot(patch, w_ref[kh, kw],
                               preferred_element_type=jnp.float32)
                acc = part if acc is None else acc + part
        y = acc + shift
        y = y * pl.reciprocal(1.0 + jnp.exp(-y), approx=True)   # SiLU
        o_ref[0, pl.ds(r0, rc), :, :] = (
            y.reshape(rc, out_w, y.shape[-1]).astype(o_ref.dtype))
        r0 += rc


# ----------------------------------------------------------------------------
# Tile pickers (VMEM-budget aware).
# ----------------------------------------------------------------------------
def _pick_tile_m(M, ckp, c2p, esize, budget, cap_rows):
    fixed = 2 * ckp * c2p * esize + 8 * c2p * 4
    per_row = 2 * ckp * esize + 2 * c2p * esize + (ckp * esize + c2p * 4)
    rows = (budget - fixed) // per_row
    rows = max(8, min(int(rows), cap_rows, _round_up(M, 8)))
    return (rows // 8) * 8


def _pick_tile_h(H, Wp, W, c1p, c2p, k, esize, budget, rows_cap):
    halo = k - 1
    fixed = (2 * k * k * c1p * c2p * esize          # weight slab, double-buffered
             + 2 * halo * Wp * c1p * esize          # halo rows of the 2-slot buffer
             + 8 * c2p * 4)
    per_row = (2 * Wp * c1p * esize                 # input buffer (2 slots)
               + 2 * W * c2p * esize                # output tile, double-buffered
               + W * (c1p * esize + c2p * 4))       # live register block slack
    best = 1
    for th in range(1, min(H, rows_cap) + 1):
        if H % th:
            continue
        if fixed + th * per_row <= budget:
            best = th
    return best


# ----------------------------------------------------------------------------
# Wrappers.
# ----------------------------------------------------------------------------
def _conv_small_c1(x_sp, w_folded, shift_p, *, N, H, W, K, C1, C2, C2P,
                   compute_dtype, tile_m, budget, vmem_ceiling):
    """im2col path: fold K*K taps into the contraction dim (K*K*C1 <= 128)."""
    CK = K * K * C1
    CKP = _round_up(CK, _LANE)
    esize = jnp.dtype(compute_dtype).itemsize

    patches = jnp.concatenate(
        [x_sp[:, kh:kh + H, kw:kw + W, :] for kh in range(K) for kw in range(K)],
        axis=-1)                                     # (N, H, W, K*K*C1)
    M = H * W
    if tile_m is None:
        tile_m = _pick_tile_m(M, CKP, C2P, esize, budget, 8 * _REG_ROWS_MM)
    tile_m = max(8, (int(tile_m) // 8) * 8)
    Mp = _round_up(M, tile_m)
    nM = Mp // tile_m

    patches = patches.reshape(N, M, CK)
    patches = jnp.pad(patches, ((0, 0), (0, Mp - M), (0, CKP - CK))
                      ).astype(compute_dtype)
    w2 = jnp.pad(w_folded.reshape(CK, C2), ((0, CKP - CK), (0, C2P - C2))
                 ).astype(compute_dtype)

    need = (2 * tile_m * CKP * esize + 2 * tile_m * C2P * esize
            + 2 * CKP * C2P * esize + tile_m * (CKP * esize + C2P * 4))
    vmem_limit = int(min(vmem_ceiling, max(32 << 20, need + (4 << 20))))

    ce = pl.CostEstimate(
        flops=2 * N * Mp * CKP * C2P,
        transcendentals=N * Mp * C2P,
        bytes_accessed=(N * Mp * (CKP + C2P) + CKP * C2P) * esize)

    kernel = functools.partial(_matmul_bn_silu_kernel, tm=tile_m)
    out_p = pl.pallas_call(
        kernel,
        out_shape=jax.ShapeDtypeStruct((N, Mp, C2P), compute_dtype),
        grid_spec=pltpu.PrefetchScalarGridSpec(
            num_scalar_prefetch=0,
            grid=(N, nM),
            in_specs=[
                pl.BlockSpec((1, tile_m, CKP), lambda n, m: (n, m, 0)),
                pl.BlockSpec((CKP, C2P), lambda n, m: (0, 0)),
                pl.BlockSpec((1, C2P), lambda n, m: (0, 0)),
            ],
            out_specs=pl.BlockSpec((1, tile_m, C2P), lambda n, m: (n, m, 0)),
        ),
        compiler_params=pltpu.CompilerParams(
            dimension_semantics=("parallel", "parallel"),
            vmem_limit_bytes=vmem_limit),
        cost_estimate=ce,
    )(patches, w2, shift_p)

    return out_p[:, :M, :C2].reshape(N, H, W, C2)


def _conv_taps(x_sp, w_folded, shift_p, *, N, H, W, K, C1, C2, C2P,
               compute_dtype, tile_h, budget, vmem_ceiling):
    """General path: per-tap MXU matmuls with in-kernel halo DMA."""
    pad = K // 2
    halo = K - 1
    Hp, Wp = H + 2 * pad, W + 2 * pad
    C1P = _round_up(C1, _LANE)
    esize = jnp.dtype(compute_dtype).itemsize

    x_p = jnp.pad(x_sp, ((0, 0), (0, 0), (0, 0), (0, C1P - C1))
                  ).astype(compute_dtype)                         # (N, Hp, Wp, C1P)
    w_p = jnp.pad(w_folded, ((0, 0), (0, 0), (0, C1P - C1), (0, C2P - C2))
                  ).astype(compute_dtype)                         # (K, K, C1P, C2P)

    rows_per_block = max(1, _REG_ROWS_TAPS // W)
    rows_cap = 8 * rows_per_block
    if tile_h is None:
        tile_h = _pick_tile_h(H, Wp, W, C1P, C2P, K, esize, budget, rows_cap)
    assert H % tile_h == 0, "tile_h must divide H"
    nH = H // tile_h

    need = (2 * (tile_h + halo) * Wp * C1P * esize
            + 2 * tile_h * W * C2P * esize
            + 2 * K * K * C1P * C2P * esize
            + rows_per_block * W * (C1P * esize + C2P * 4))
    vmem_limit = int(min(vmem_ceiling, max(32 << 20, need + (4 << 20))))

    ce = pl.CostEstimate(
        flops=2 * N * H * W * K * K * C1P * C2P,
        transcendentals=N * H * W * C2P,
        bytes_accessed=(N * Hp * Wp * C1P + K * K * C1P * C2P
                        + N * H * W * C2P) * esize)

    kernel = functools.partial(_conv_tap_bn_silu_kernel, th=tile_h, out_w=W,
                               k=K, halo=halo, rows_per_block=rows_per_block)
    out_p = pl.pallas_call(
        kernel,
        out_shape=jax.ShapeDtypeStruct((N, H, W, C2P), compute_dtype),
        grid_spec=pltpu.PrefetchScalarGridSpec(
            num_scalar_prefetch=0,
            grid=(N, nH),
            in_specs=[
                pl.BlockSpec(memory_space=pl.ANY),                # x stays in HBM
                pl.BlockSpec((K, K, C1P, C2P), lambda n, h: (0, 0, 0, 0)),
                pl.BlockSpec((1, C2P), lambda n, h: (0, 0)),
            ],
            out_specs=pl.BlockSpec((1, tile_h, W, C2P), lambda n, h: (n, h, 0, 0)),
            scratch_shapes=[
                pltpu.VMEM((2, tile_h + halo, Wp, C1P), compute_dtype),
                pltpu.SemaphoreType.DMA((2,)),
            ],
        ),
        compiler_params=pltpu.CompilerParams(
            dimension_semantics=("parallel", "arbitrary"),
            vmem_limit_bytes=vmem_limit),
        cost_estimate=ce,
    )(x_p, w_p, shift_p)

    return out_p[..., :C2]


def conv_bn_silu(x_nchw, w, gamma, beta, run_mean, run_var, *, eps=1e-3,
                 compute_dtype=jnp.bfloat16, tile_h=None, tile_m=None,
                 vmem_budget_bytes=None):
    """Conv2d(k, s=1, p=k//2, bias=False) + BatchNorm2d(eval, eps) + SiLU.

    x_nchw: (N, C1, H, W) f32.  w: (K, K, C1, C2) HWIO.  Returns (N, C2, H, W) f32.
    """
    N, C1, H, W = x_nchw.shape
    K = w.shape[0]
    C2 = w.shape[-1]
    assert w.shape == (K, K, C1, C2) and K % 2 == 1
    pad = K // 2

    cap = _vmem_capacity_bytes()
    budget = vmem_budget_bytes if vmem_budget_bytes is not None else (3 * cap) // 4
    vmem_ceiling = (7 * cap) // 8     # leave headroom for compiler scratch

    # BN folding: scale into the weights, shift passed separately (f32).
    scale = gamma / jnp.sqrt(run_var + eps)                       # (C2,)
    shift = beta - run_mean * scale                               # (C2,)
    w_folded = w.astype(jnp.float32) * scale[None, None, None, :]
    C2P = _round_up(C2, _LANE)
    shift_p = jnp.pad(shift, (0, C2P - C2)).reshape(1, C2P).astype(jnp.float32)

    # NCHW -> NHWC + spatial "same" padding (channels last -> lanes).
    x_nhwc = jnp.transpose(x_nchw, (0, 2, 3, 1))
    x_sp = jnp.pad(x_nhwc, ((0, 0), (pad, pad), (pad, pad), (0, 0)))

    common = dict(N=N, H=H, W=W, K=K, C1=C1, C2=C2, C2P=C2P,
                  compute_dtype=compute_dtype, budget=budget,
                  vmem_ceiling=vmem_ceiling)
    if K * K * C1 <= _LANE:
        out_nhwc = _conv_small_c1(x_sp, w_folded, shift_p, tile_m=tile_m, **common)
    else:
        out_nhwc = _conv_taps(x_sp, w_folded, shift_p, tile_h=tile_h, **common)

    return jnp.transpose(out_nhwc, (0, 3, 1, 2)).astype(jnp.float32)


def _reference(x_nchw, w, gamma, beta, run_mean, run_var, eps=1e-3):
    """Pure-JAX reference (NCHW conv + BN(eval) + SiLU)."""
    w_oihw = jnp.transpose(w, (3, 2, 0, 1))  # (C2, C1, K, K)
    y = jax.lax.conv_general_dilated(
        x_nchw, w_oihw, window_strides=(1, 1), padding="SAME",
        dimension_numbers=("NCHW", "OIHW", "NCHW"))
    scale = (gamma / jnp.sqrt(run_var + eps)).reshape(1, -1, 1, 1)
    shift = (beta - run_mean * gamma / jnp.sqrt(run_var + eps)).reshape(1, -1, 1, 1)
    y = y * scale + shift
    return y * jax.nn.sigmoid(y)


if __name__ == "__main__":
    key = jax.random.PRNGKey(0)

    def make_case(k, N, C1, C2, H, W, K):
        ks = jax.random.split(k, 6)
        x = jax.random.normal(ks[0], (N, C1, H, W), dtype=jnp.float32)
        w = jax.random.normal(ks[1], (K, K, C1, C2), dtype=jnp.float32) * 0.1
        gamma = 1.0 + 0.1 * jax.random.normal(ks[2], (C2,), dtype=jnp.float32)
        beta = 0.1 * jax.random.normal(ks[3], (C2,), dtype=jnp.float32)
        mean = 0.1 * jax.random.normal(ks[4], (C2,), dtype=jnp.float32)
        var = jnp.abs(jax.random.normal(ks[5], (C2,), dtype=jnp.float32)) + 0.5
        return x, w, gamma, beta, mean, var

    k1, k2 = jax.random.split(key)

    # Case 1: stem layer Conv(c1=4, c2=8, k=3) -> im2col path (K*K*C1 = 36 <= 128).
    args1 = make_case(k1, 2, 4, 8, 16, 16, 3)
    ref1 = _reference(*args1)
    out1_f32 = conv_bn_silu(*args1, compute_dtype=jnp.float32)
    jax.block_until_ready(out1_f32)
    assert out1_f32.shape == ref1.shape
    # Tolerances cover default-precision MXU and the approx-reciprocal SiLU.
    assert jnp.allclose(out1_f32, ref1, rtol=1e-2, atol=1e-2), "case1 f32 mismatch"
    out1_bf16 = conv_bn_silu(*args1)                    # default bf16 compute
    jax.block_until_ready(out1_bf16)
    assert jnp.allclose(out1_bf16, ref1, rtol=5e-2, atol=5e-2), "case1 bf16 mismatch"

    # Case 2: Conv(c1=16, c2=8, k=3) -> tap-loop path (K*K*C1 = 144 > 128) with
    # manual halo DMA; tile_h=8 exercises the double-buffered H pipeline.
    args2 = make_case(k2, 2, 16, 8, 16, 16, 3)
    ref2 = _reference(*args2)
    out2_f32 = conv_bn_silu(*args2, compute_dtype=jnp.float32, tile_h=8)
    jax.block_until_ready(out2_f32)
    assert out2_f32.shape == ref2.shape
    assert jnp.allclose(out2_f32, ref2, rtol=1e-2, atol=1e-2), "case2 f32 mismatch"
    out2_bf16 = conv_bn_silu(*args2)                    # auto tile_h, bf16
    jax.block_until_ready(out2_bf16)
    assert jnp.allclose(out2_bf16, ref2, rtol=5e-2, atol=5e-2), "case2 bf16 mismatch"

    print("KERNEL_OK")
</pallas_src>

<mosaic_0001>
module attributes {stable_mosaic.version = 11 : i64} {
  func.func @_matmul_bn_silu_kernel(%arg0: i32, %arg1: i32, %arg2: memref<1x256x128xf32, #tpu.memory_space<vmem>>, %arg3: memref<128x128xf32, #tpu.memory_space<vmem>>, %arg4: memref<1x128xf32, #tpu.memory_space<vmem>>, %arg5: memref<1x256x128xf32, #tpu.memory_space<vmem>>) attributes {dimension_semantics = [#tpu.dimension_semantics<parallel>, #tpu.dimension_semantics<parallel>], iteration_bounds = array<i64: 2, 1>, scalar_prefetch = 0 : i64, scratch_operands = 0 : i64, tpu.core_type = #tpu.core_type<tc>, window_params = [{transform_indices = @transform_0, window_bounds = array<i64: 1, 256, 128>}, {pipeline_mode = #tpu.pipeline_mode<synchronous>, transform_indices = @transform_1, window_bounds = array<i64: 128, 128>}, {pipeline_mode = #tpu.pipeline_mode<synchronous>, transform_indices = @transform_2, window_bounds = array<i64: 1, 128>}, {transform_indices = @transform_3, window_bounds = array<i64: 1, 256, 128>}]} {
    %c0 = arith.constant 0 : index
    %c0_0 = arith.constant 0 : index
    %0 = vector.load %arg4[%c0, %c0_0] : memref<1x128xf32, #tpu.memory_space<vmem>>, vector<1x128xf32>
    %c0_1 = arith.constant 0 : index
    %c0_2 = arith.constant 0 : index
    %c0_3 = arith.constant 0 : index
    %1 = vector.load %arg2[%c0_1, %c0_2, %c0_3] : memref<1x256x128xf32, #tpu.memory_space<vmem>>, vector<1x256x128xf32>
    %2 = vector.shape_cast %1 : vector<1x256x128xf32> to vector<256x128xf32>
    %c0_4 = arith.constant 0 : index
    %c0_5 = arith.constant 0 : index
    %3 = vector.load %arg3[%c0_4, %c0_5] : memref<128x128xf32, #tpu.memory_space<vmem>>, vector<128x128xf32>
    %cst = arith.constant dense<0.000000e+00> : vector<256x128xf32>
    %4 = tpu.matmul %2, %3, %cst {dimension_numbers = #tpu.dot_dimension_numbers<[1], [0], [0], [1], [0, 0, 1, 1], [], []>} : vector<256x128xf32>, vector<128x128xf32>, vector<256x128xf32> -> vector<256x128xf32>
    %5 = vector.broadcast %0 : vector<1x128xf32> to vector<256x128xf32>
    %6 = arith.addf %4, %5 : vector<256x128xf32>
    %cst_6 = arith.constant 0.000000e+00 : f32
    %7 = vector.broadcast %cst_6 : f32 to vector<256x128xf32>
    %8 = arith.subf %7, %6 : vector<256x128xf32>
    %9 = math.exp %8 : vector<256x128xf32>
    %cst_7 = arith.constant 1.000000e+00 : f32
    %10 = vector.broadcast %cst_7 : f32 to vector<256x128xf32>
    %11 = arith.addf %10, %9 : vector<256x128xf32>
    %12 = tpu.reciprocal %11 {approx = true} : vector<256x128xf32> -> vector<256x128xf32>
    %13 = arith.mulf %6, %12 : vector<256x128xf32>
    %c0_8 = arith.constant 0 : index
    %c0_9 = arith.constant 0 : index
    %c0_10 = arith.constant 0 : index
    %14 = vector.load %arg5[%c0_8, %c0_9, %c0_10] : memref<1x256x128xf32, #tpu.memory_space<vmem>>, vector<1x256x128xf32>
    %15 = vector.shape_cast %14 : vector<1x256x128xf32> to vector<256x128xf32>
    %16 = vector.shape_cast %13 : vector<256x128xf32> to vector<1x256x128xf32>
    tpu.vector_store %arg5[%c0_8, %c0_9, %c0_10], %16 {strides = array<i32>} : memref<1x256x128xf32, #tpu.memory_space<vmem>>, vector<1x256x128xf32>,
    return
  }
  func.func @transform_0(%arg0: i32, %arg1: i32) -> (i32, i32, i32) {
    %c0_i32 = arith.constant 0 : i32
    %c0_i32_0 = arith.constant 0 : i32
    return %arg0, %arg1, %c0_i32 : i32, i32, i32
  }
  func.func @transform_1(%arg0: i32, %arg1: i32) -> (i32, i32) {
    %c0_i32 = arith.constant 0 : i32
    %c0_i32_0 = arith.constant 0 : i32
    %c0_i32_1 = arith.constant 0 : i32
    return %c0_i32, %c0_i32_0 : i32, i32
  }
  func.func @transform_2(%arg0: i32, %arg1: i32) -> (i32, i32) {
    %c0_i32 = arith.constant 0 : i32
    %c0_i32_0 = arith.constant 0 : i32
    %c0_i32_1 = arith.constant 0 : i32
    return %c0_i32, %c0_i32_0 : i32, i32
  }
  func.func @transform_3(%arg0: i32, %arg1: i32) -> (i32, i32, i32) {
    %c0_i32 = arith.constant 0 : i32
    %c0_i32_0 = arith.constant 0 : i32
    return %arg0, %arg1, %c0_i32 : i32, i32, i32
  }
}

</mosaic_0001>

<bundles_post_ra>
// kernel: tpu_custom_call.1
= control target key start
LH: loop header
LB: loop body
LE: loop exit
PB: predicated region body
PF: predicated region fallthrough
CT: control target
= control target key end

     0   :  { %8 = vsyncpa [#allocation3], 0  ;;  %s1899_s0 = inlined_call_operand.hbm [shape: f32[2,256,128], index: 0, kind: input, shape index: {}]   ;;  %s1900_s1 = inlined_call_operand.hbm [shape: f32[128,128], index: 1, kind: input, shape index: {}]   ;;  %s1901_s2 = inlined_call_operand.vmem [shape: f32[1,128], index: 2, kind: input, shape index: {}]   ;;  %s1902_s3 = inlined_call_operand.hbm [shape: f32[2,256,128], index: 3, kind: output, shape index: {}]  }
   0x1   :  { %10 = vsyncpa [#allocation3 + $0x1], 0 }
   0x2   :  { %11 = vsyncpa [#allocation6], 0 }
   0x3   :  { %12 = vsyncpa [#allocation4], 0 }
   0x4   :  { %14 = vsyncpa [#allocation4 + $0x1], 0  ;;  %s1415_s12 = smov 0   ;;  %s1417_s13 = smov 0  }
   0x5   :  { %s1419_s14 = smov 0   ;;  %s1421_s15 = smov 0  }
   0x6   :  { %s1423_s16 = smov 0   ;;  %s1425_s17 = smov 0  }
   0x7 LB: > { %s841_s18 = sadd.s32 4294967295, %s1386_s17   ;;  %s842_s19 = sadd.s32 4294967294, %s1386_s17   ;;  %s1386_s17 = sphi %s1425_s17, %s20_s17   ;;  %s1382_s16 = sphi %s1423_s16, %s1926_s16   ;;  %s1378_s15 = sphi %s1421_s15, %s1925_s15   ;;  %s1374_s14 = sphi %s1419_s14, %s1924_s14   ;;  %s1370_s13 = sphi %s1417_s13, %s1923_s13   ;;  %s1366_s12 = sphi %s1415_s12, %s1922_s12  }
   0x8   : > { %p54_p0 = scmp.ne.s32.totalorder %s1370_s13, %s1366_s12  ;;  %p1449_p1 = scmp.eq.s32.totalorder %s841_s18, 0 }
   0x9   : > { %p1453_p2 = scmp.eq.s32.totalorder %s841_s18, 1  ;;  %p128_p3 = scmp.eq.s32.totalorder %s842_s19, 1 }
   0xa   : > { %s1907_s20 = scalar_select %p1449_p1, 1, 0 }
   0xb   : > { %s1908_s21 = scalar_select %p1453_p2, 1, 0 }
   0xc   : > { %p1459_p4 = por %p1449_p1, %p54_p0  ;;  %p843_p5 = scmp.ge.s32.totalorder %s1386_s17, 1 }
   0xd   : > { %p1464_p6 = por %p128_p3, %p54_p0  ;;  %p135_p7 = scmp.lt.s32.totalorder %s1386_s17, 3 }
   0xe   : > { %s1909_s22 = scalar_select %p1459_p4, 1, 0 }
   0xf   : > { %s1910_s23 = scalar_select %p1464_p6, 1, 0 }
  0x10   : > { %p1469_p8 = pnand %p843_p5, %p135_p7  ;;  %s1388_s25 = smov [#allocation5]  }
  0x11   : > { %s147_s26 = sshll.u32 %s1388_s25, 4  ;;  %s32_s28 = sadd.s32 1, %s1382_s16  ;;  %s148_s26 = int_to_ptr.vmem [resolvable:$true] %s147_s26 }
  0x12   : > { %s1911_s24 = scalar_select %p1469_p8, 1, 0 }
  0x13   : > { %p1045_p9 = pneg %p1469_p8  ;;  %s1242_s4 = scalar_lea.hbm %s1900_s1, 2048 }
  0x14   : > { %p1243_p12 = scmp.ne.s32.totalorder %s1900_s1, %s1242_s4  ;;  %p1249_p5 = scmp.lt.u32.totalorder %s1242_s4, %s1900_s1 }
  0x15   : > { %p1478_p11 = pnand %p1045_p9, %p1449_p1 }
  0x17   : > { %p1244_p13 = pneg %p1478_p11 }
  0x19   : > { %p1245_p0 = pnand %p1244_p13, %p1243_p12 }
  0x1b   : > { %p1246_p3 = pneg %p1245_p0 }
  0x1d   : > { %p1251_p7 = pnand %p1249_p5, %p1246_p3 }
  0x1f   : > { %1254 = shalt.err (!%p1251_p7)
}
  0x20   : > { %s1255_s9 = scalar_lea.vmem %s148_s26, 2048  ;;  %p1263_p1 = scmp.lt.s32.totalorder %s148_s26, %s148_s26 }
  0x21   : > { %p1256_p9 = scmp.ne.s32.totalorder %s148_s26, %s1255_s9  ;;  %p1264_p4 = scmp.lt.s32.totalorder %s1255_s9, %s1255_s9 }
  0x23   : > { %p1258_p10 = pnand %p1256_p9, %p1244_p13  ;;  %p1265_p8 = por %p1264_p4, %p1263_p1 }
  0x25   : > { %p1259_p6 = pneg %p1258_p10 }
  0x27   : > { %p1266_p2 = pnand %p1265_p8, %p1259_p6 }
  0x29   : > { %1269 = shalt.err (!%p1266_p2)
}
  0x2a   : > { %s1389_s10 = smov 128   ;;  %s1390_s11 = smov 8  }
  0x2b   : > { %1048 = dma.hbm_to_vmem [thread:$0]  (!%p1478_p11), %s1900_s1, 2048, %s148_s26, [#allocation6], %s1389_s10, %s1389_s10, %s1390_s11  }
  0x2c   : > { %p34_p1 = scmp.ge.s32.totalorder %s32_s28, 2  ;;  %s41_s25 = sadd.s32 1, %s1374_s14 }
  0x2d   : > { %p48_p2 = scmp.ne.s32.totalorder %s1374_s14, %s1370_s13  ;;  %p49_p4 = scmp.eq.s32.totalorder %s1386_s17, 0 }
  0x2e   : > { %s1928_s28 = smov (%p34_p1, %s32_s28), 0  ;;  %p1914_p8 = scmp.ne.s32.totalorder %s1908_s21, 0 }
  0x2f   : > { %p1508_p6 = por %p49_p4, %p48_p2  ;;  %s36_s30 = ssub.s32 %s1382_s16, %s1928_s28 }
  0x30   : > { %p1514_p10 = por %p1914_p8, %p48_p2  ;;  %p1058_p12 = scmp.lt.s32.totalorder %s1386_s17, 2 }
  0x31   : > { %p39_p11 = scmp.eq.s32.totalorder %s36_s30, 0  ;;  %s164_s26 = sand.u32 1, %s1374_s14  }
  0x32   : > { %s846_s4 = sshll.u32 %s164_s26, 8  ;;  %s859_s6 = sshll.u32 %s1382_s16, 12 }
  0x33   : > { %s1523_s5 = scalar_select %p39_p11, %s1374_s14, %s41_s25  }
  0x34   : > { %s1529_s9 = scalar_lea.hbm %s1899_s0, %s859_s6  ;;  %s168_s21 = scalar_lea.vmem [#allocation2], %s846_s4 }
  0x35   : > { %s177_s18 = sshll.u32 %s168_s21, 4  ;;  %p1535_p13 = pnand %p1058_p12, %p1508_p6  ;;  %s1531_s18 = int_to_ptr.vmem [resolvable:$true] %s177_s18 }
  0x36   : > { %s1539_s25 = scalar_lea.sflag [#allocation3], %s164_s26  ;;  %s1270_s30 = scalar_lea.hbm %s1529_s9, 4096 }
  0x37   : > { %p1271_p0 = scmp.ne.s32.totalorder %s1529_s9, %s1270_s30  ;;  %p1272_p3 = pneg %p1535_p13 }
  0x38   : > { %s1275_s29 = scalar_lea.hbm %s1899_s0, 8192  ;;  %p1276_p9 = scmp.lt.u32.totalorder %s1529_s9, %s1899_s0 }
  0x39   : > { %p1273_p5 = pnand %p1272_p3, %p1271_p0  ;;  %p1277_p1 = scmp.lt.u32.totalorder %s1275_s29, %s1270_s30 }
  0x3a   : > { %p1279_p4 = scmp.lt.u32.totalorder %s1270_s30, %s1529_s9 }
  0x3b   : > { %p1274_p7 = pneg %p1273_p5  ;;  %p1278_p2 = por %p1277_p1, %p1276_p9 }
  0x3d   : > { %p1280_p6 = por %p1279_p4, %p1278_p2 }
  0x3f   : > { %p1281_p8 = pnand %p1280_p6, %p1274_p7 }
  0x41   : > { %1284 = shalt.err (!%p1281_p8)
}
  0x42   : > { %s1285_s26 = scalar_lea.vmem %s1531_s18, 4096  ;;  %s1391_s21 = smov [#allocation2]  }
  0x43   : > { %p1286_p12 = scmp.ne.s32.totalorder %s1531_s18, %s1285_s26  ;;  %s1290_s4 = sshll.u32 %s1391_s21, 4  ;;  %s1291_s4 = int_to_ptr.vmem [resolvable:$false] %s1290_s4 }
  0x44   : > { %s1292_s6 = scalar_lea.vmem %s1291_s4, 8192  ;;  %p1293_p5 = scmp.lt.s32.totalorder %s1531_s18, %s1291_s4 }
  0x45   : > { %p1288_p11 = pnand %p1286_p12, %p1272_p3  ;;  %p1294_p9 = scmp.lt.s32.totalorder %s1292_s6, %s1285_s26 }
  0x47   : > { %p1289_p0 = pneg %p1288_p11  ;;  %p1295_p1 = por %p1294_p9, %p1293_p5 }
  0x49   : > { %p1296_p2 = pnand %p1295_p1, %p1289_p0 }
  0x4b   : > { %1299 = shalt.err (!%p1296_p2)
}
  0x4c   : > { %1052 = dma.hbm_to_vmem [thread:$0]  (!%p1535_p13), %s1529_s9, 4096, %s1531_s18, %s1539_s25, %s1389_s10, %s1389_s10, %s1390_s11  }
  0x4d   : > { %p1917_p3 = scmp.ne.s32.totalorder %s1911_s24, 0 }
  0x4e   : > { %s1573_s30 = sand.u32 (!%p1917_p3), 1, %s1370_s13   ;;  %p1918_p7 = scmp.ne.s32.totalorder (!%p1917_p3), %s1909_s22, 0 }
  0x4f   : > { %189 = sbr.rel (%p1917_p3) target bundleno = 442 (0x1ba), region = 32  ;;  %s850_s29 = sshll.u32 (!%p1917_p3), %s1573_s30, 8 }
  0x50   : > { %s192_s7 = scalar_lea.sflag (!%p1917_p3), [#allocation3], %s1573_s30  ;;  %s1579_s19 = scalar_lea.vmem (!%p1917_p3), [#allocation2], %s850_s29 }
  0x56   : > { %1353 = dma.done.wait (%p1918_p7), %s192_s7, 4096  }
  0x57   : > { %1355 = vsyncadd (%p1918_p7), %s192_s7, 4294963200  ;;  %p1919_p13 = scmp.ne.s32.totalorder %s1907_s20, 0 }
  0x59   : > { %1357 = dma.done.wait (%p1919_p13), [#allocation6], 2048  }
  0x5a   : > { %1359 = vsyncadd (%p1919_p13), [#allocation6], 4294965248  ;;  %v257_v0 = vld [vmem:[#allocation5] sm:$0xff]  ;;  %v258_v1 = vld [vmem:[#allocation5 + $0x8] sm:$0xff]  ;;  %s1740_s24 = scalar_lea.vmem [#allocation7], %s850_s29  ;;  %s860_s10 = sshll.u32 %s1378_s15, 12 }
  0x5b   : > { %v259_v2 = vld [vmem:[#allocation5 + $0x10] sm:$0xff]  ;;  %v989_v3 = vpack.c.bf16 %v258_v1, %v257_v0  ;;  %v260_v4 = vld [vmem:[#allocation5 + $0x18] sm:$0xff]  ;;  %v261_v6 = vld [vmem:[#allocation5 + $0x20] sm:$0xff]  ;;  %s744_s11 = sshll.u32 %s1740_s24, 4  ;;  %s1844_s15 = scalar_lea.hbm %s1902_s3, %s860_s10  ;;  %s1846_s11 = int_to_ptr.vmem [resolvable:$true] %s744_s11 }
  0x5c   : > { %v993_v5 = vpack.c.bf16 %v260_v4, %v259_v2  ;;  %v262_v7 = vld [vmem:[#allocation5 + $0x28] sm:$0xff]  ;;  %v225_v9 = vld [vmem:[%s1579_s19] sm:$0xff]  ;;  %v263_v11 = vld [vmem:[#allocation5 + $0x30] sm:$0xff]  ;;  %s729_s25 = scalar_lea.sflag [#allocation4], %s1573_s30  ;;  %s1300_s8 = scalar_lea.vmem %s1846_s11, 4096 }
  0x5d   : > { %990 = vmatprep.subr.bf16.mxu0 %v989_v3  ;;  %1021 = vmatprep.subr.bf16.mxu1 %v989_v3  ;;  %v997_v8 = vpack.c.bf16 %v262_v7, %v261_v6  ;;  %v241_v10 = vld [vmem:[%s1579_s19 + $0x80] sm:$0xff]  ;;  %v264_v12 = vld [vmem:[#allocation5 + $0x38] sm:$0xff]  ;;  %v266_v15 = vld [vmem:[#allocation5 + $0x48] sm:$0xff]  ;;  %p1301_p4 = scmp.ne.s32.totalorder %s1846_s11, %s1300_s8  ;;  %s1392_s26 = smov [#allocation7]  }
  0x5e   : > { %992 = vmatpush3.bf16.msra.mxu0 %v989_v3  ;;  %1029 = vmatpush3.bf16.msra.mxu1 %v989_v3  ;;  %v1001_v13 = vpack.c.bf16 %v264_v12, %v263_v11  ;;  %v265_v14 = vld [vmem:[#allocation5 + $0x40] sm:$0xff]  ;;  %v267_v17 = vld [vmem:[#allocation5 + $0x50] sm:$0xff]  ;;  %v268_v18 = vld [vmem:[#allocation5 + $0x58] sm:$0xff]  ;;  %s1304_s21 = sshll.u32 %s1392_s26, 4  ;;  %s1305_s21 = int_to_ptr.vmem [resolvable:$false] %s1304_s21 }
  0x5f   : > { %994 = vmatprep.subr.bf16.mxu0 %v993_v5  ;;  %1022 = vmatprep.subr.bf16.mxu1 %v993_v5  ;;  %v1005_v16 = vpack.c.bf16 %v266_v15, %v265_v14  ;;  %v1009_v19 = vpack.c.bf16 %v268_v18, %v267_v17  ;;  %v269_v20 = vld [vmem:[#allocation5 + $0x60] sm:$0xff]  ;;  %v270_v21 = vld [vmem:[#allocation5 + $0x68] sm:$0xff]  ;;  %v271_v23 = vld [vmem:[#allocation5 + $0x70] sm:$0xff]  ;;  %p1302_p6 = pnand %p1301_p4, %p1514_p10  ;;  %s1306_s4 = scalar_lea.vmem %s1305_s21, 8192 }
  0x60   : > { %941 = vmatprep.mubr.f32.mxu0 %v225_v9  ;;  %965 = vmatprep.mubr.f32.mxu1 %v241_v10  ;;  %v1013_v22 = vpack.c.bf16 %v270_v21, %v269_v20  ;;  %v272_v24 = vld [vmem:[#allocation5 + $0x78] sm:$0xff]  ;;  %v226_v26 = vld [vmem:[%s1579_s19 + $0x8] sm:$0xff]  ;;  %v227_v28 = vld [vmem:[%s1579_s19 + $0x10] sm:$0xff]  ;;  %p1307_p12 = scmp.lt.s32.totalorder %s1846_s11, %s1305_s21  ;;  %p1308_p11 = scmp.lt.s32.totalorder %s1306_s4, %s1300_s8 }
  0x61   : > { %v1017_v25 = vpack.c.bf16 %v272_v24, %v271_v23  ;;  %v242_v27 = vld [vmem:[%s1579_s19 + $0x88] sm:$0xff]  ;;  %v243_v29 = vld [vmem:[%s1579_s19 + $0x90] sm:$0xff]  ;;  %v228_v30 = vld [vmem:[%s1579_s19 + $0x18] sm:$0xff]  ;;  %p1303_p8 = pneg %p1302_p6 }
  0x62   : > { %996 = vmatpush3.bf16.msra.mxu0 %v993_v5  ;;  %1030 = vmatpush3.bf16.msra.mxu1 %v993_v5  ;;  %v244_v31 = vld [vmem:[%s1579_s19 + $0x98] sm:$0xff]  ;;  %v229_v32 = vld [vmem:[%s1579_s19 + $0x20] sm:$0xff]  ;;  %v230_v34 = vld [vmem:[%s1579_s19 + $0x28] sm:$0xff]  ;;  %p1309_p0 = por %p1308_p11, %p1307_p12 }
  0x63   : > { %998 = vmatprep.subr.bf16.mxu0 %v997_v8  ;;  %1023 = vmatprep.subr.bf16.mxu1 %v997_v8  ;;  %v245_v33 = vld [vmem:[%s1579_s19 + $0xa0] sm:$0xff]  ;;  %v246_v35 = vld [vmem:[%s1579_s19 + $0xa8] sm:$0xff]  ;;  %v231_v36 = vld [vmem:[%s1579_s19 + $0x30] sm:$0xff] }
  0x64   : > { %v247_v37 = vld [vmem:[%s1579_s19 + $0xb0] sm:$0xff]  ;;  %v232_v38 = vld [vmem:[%s1579_s19 + $0x38] sm:$0xff]  ;;  %v233_v40 = vld [vmem:[%s1579_s19 + $0x40] sm:$0xff]  ;;  %p1310_p5 = pnand %p1309_p0, %p1303_p8 }
  0x65   : > { %v248_v39 = vld [vmem:[%s1579_s19 + $0xb8] sm:$0xff]  ;;  %v249_v41 = vld [vmem:[%s1579_s19 + $0xc0] sm:$0xff]  ;;  %v234_v42 = vld [vmem:[%s1579_s19 + $0x48] sm:$0xff] }
  0x66   : > { %1000 = vmatpush3.bf16.msra.mxu0 %v997_v8  ;;  %1031 = vmatpush3.bf16.msra.mxu1 %v997_v8  ;;  %v250_v43 = vld [vmem:[%s1579_s19 + $0xc8] sm:$0xff]  ;;  %v235_v44 = vld [vmem:[%s1579_s19 + $0x50] sm:$0xff]  ;;  %v236_v46 = vld [vmem:[%s1579_s19 + $0x58] sm:$0xff] }
  0x67   : > { %1002 = vmatprep.subr.bf16.mxu0 %v1001_v13  ;;  %1024 = vmatprep.subr.bf16.mxu1 %v1001_v13  ;;  %v251_v45 = vld [vmem:[%s1579_s19 + $0xd0] sm:$0xff]  ;;  %v252_v47 = vld [vmem:[%s1579_s19 + $0xd8] sm:$0xff]  ;;  %v237_v48 = vld [vmem:[%s1579_s19 + $0x60] sm:$0xff] }
  0x68   : > { %v253_v49 = vld [vmem:[%s1579_s19 + $0xe0] sm:$0xff]  ;;  %v238_v50 = vld [vmem:[%s1579_s19 + $0x68] sm:$0xff]  ;;  %v239_v52 = vld [vmem:[%s1579_s19 + $0x70] sm:$0xff] }
  0x69   : > { %v254_v51 = vld [vmem:[%s1579_s19 + $0xe8] sm:$0xff]  ;;  %v255_v53 = vld [vmem:[%s1579_s19 + $0xf0] sm:$0xff]  ;;  %v240_v54 = vld [vmem:[%s1579_s19 + $0x78] sm:$0xff] }
  0x6a   : > { %1004 = vmatpush3.bf16.msra.mxu0 %v1001_v13  ;;  %1032 = vmatpush3.bf16.msra.mxu1 %v1001_v13  ;;  %v256_v55 = vld [vmem:[%s1579_s19 + $0xf8] sm:$0xff]  ;;  %v1624_v56 = vld [vmem:[%s1901_s2] ss:$0 sm:$0xff] }
  0x6b   : > { %1006 = vmatprep.subr.bf16.mxu0 %v1005_v16  ;;  %1025 = vmatprep.subr.bf16.mxu1 %v1005_v16 }
  0x6e   : > { %1008 = vmatpush3.bf16.msra.mxu0 %v1005_v16  ;;  %1033 = vmatpush3.bf16.msra.mxu1 %v1005_v16 }
  0x6f   : > { %1010 = vmatprep.subr.bf16.mxu0 %v1009_v19  ;;  %1026 = vmatprep.subr.bf16.mxu1 %v1009_v19 }
  0x72   : > { %1012 = vmatpush3.bf16.msra.mxu0 %v1009_v19  ;;  %1034 = vmatpush3.bf16.msra.mxu1 %v1009_v19 }
  0x73   : > { %1014 = vmatprep.subr.bf16.mxu0 %v1013_v22  ;;  %1027 = vmatprep.subr.bf16.mxu1 %v1013_v22 }
  0x76   : > { %1016 = vmatpush3.bf16.msra.mxu0 %v1013_v22  ;;  %1035 = vmatpush3.bf16.msra.mxu1 %v1013_v22 }
  0x77   : > { %1018 = vmatprep.subr.bf16.mxu0 %v1017_v25  ;;  %1028 = vmatprep.subr.bf16.mxu1 %v1017_v25 }
  0x7a   : > { %1020 = vmatpush3.bf16.msra.mxu0 %v1017_v25  ;;  %1036 = vmatpush3.bf16.msra.mxu1 %v1017_v25 }
  0x7d   : > { %942 = vmatmul.mubr.f32.vlgmr.msra.gmra.mrb[0].mxu0 %v226_v26  ;;  %966 = vmatmul.mubr.f32.vlgmr.msra.gmra.mrb[0].mxu1 %v242_v27 }
  0x7e   : > { %944 = vmatprep.mubr.f32.mxu0 %v227_v28  ;;  %968 = vmatprep.mubr.f32.mxu1 %v243_v29 }
  0x81   : > { %945 = vmatmul.mubr.f32.gmra.mrb[2].mxu0 %v228_v30  ;;  %969 = vmatmul.mubr.f32.gmra.mrb[2].mxu1 %v244_v31 }
  0x82   : > { %947 = vmatprep.mubr.f32.mxu0 %v229_v32  ;;  %971 = vmatprep.mubr.f32.mxu1 %v245_v33 }
  0x85   : > { %948 = vmatmul.mubr.f32.gmra.mrb[4].mxu0 %v230_v34  ;;  %972 = vmatmul.mubr.f32.gmra.mrb[4].mxu1 %v246_v35 }
  0x86   : > { %950 = vmatprep.mubr.f32.mxu0 %v231_v36  ;;  %974 = vmatprep.mubr.f32.mxu1 %v247_v37 }
  0x89   : > { %951 = vmatmul.mubr.f32.gmra.mrb[6].mxu0 %v232_v38  ;;  %975 = vmatmul.mubr.f32.gmra.mrb[6].mxu1 %v248_v39 }
  0x8a   : > { %953 = vmatprep.mubr.f32.mxu0 %v233_v40  ;;  %977 = vmatprep.mubr.f32.mxu1 %v249_v41 }
  0x8d   : > { %954 = vmatmul.mubr.f32.gmra.mrb[8].mxu0 %v234_v42  ;;  %978 = vmatmul.mubr.f32.gmra.mrb[8].mxu1 %v250_v43 }
  0x8e   : > { %956 = vmatprep.mubr.f32.mxu0 %v235_v44  ;;  %980 = vmatprep.mubr.f32.mxu1 %v251_v45 }
  0x91   : > { %957 = vmatmul.mubr.f32.gmra.mrb[10].mxu0 %v236_v46  ;;  %981 = vmatmul.mubr.f32.gmra.mrb[10].mxu1 %v252_v47 }
  0x92   : > { %959 = vmatprep.mubr.f32.mxu0 %v237_v48  ;;  %983 = vmatprep.mubr.f32.mxu1 %v253_v49 }
  0x95   : > { %960 = vmatmul.mubr.f32.gmra.mrb[12].mxu0 %v238_v50  ;;  %984 = vmatmul.mubr.f32.gmra.mrb[12].mxu1 %v254_v51 }
  0x96   : > { %962 = vmatprep.mubr.f32.mxu0 %v239_v52  ;;  %986 = vmatprep.mubr.f32.mxu1 %v255_v53 }
  0x99   : > { %963 = vmatmul.mubr.f32.gmra.mrb[14].mxu0 %v240_v54  ;;  %987 = vmatmul.mubr.f32.gmra.mrb[14].mxu1 %v256_v55 }
 0x150   : > { %v943_v57 = vpop.f32.mrb[0].mxu0  ;;  %v967_v58 = vpop.f32.mrb[0].mxu1 }
 0x151   : > { %v1627_v59 = vadd.f32 %v943_v57, %v1624_v56  ;;  %v1630_v60 = vadd.f32 %v967_v58, %v1624_v56  ;;  %v345_v61 = vpop.f32.mrb[1].mxu0  ;;  %v425_v62 = vpop.f32.mrb[1].mxu1 }
 0x152   : > { %v1633_v63 = vadd.f32 %v1624_v56, %v345_v61  ;;  %v1636_v0 = vadd.f32 %v1624_v56, %v425_v62 }
 0x153   : > { %v505_v1 = vsub.f32 0.0, %v1627_v59  ;;  %v521_v2 = vsub.f32 0.0, %v1630_v60 }
 0x154   : > { %v504_v3 = vsub.f32 0.0, %v1633_v63  ;;  %v520_v4 = vsub.f32 0.0, %v1636_v0  ;;  %v946_v5 = vpop.f32.mrb[2].mxu0  ;;  %v970_v6 = vpop.f32.mrb[2].mxu1 }
 0x155   : > { %v538_v7 = vmul.f32 1.442695, %v505_v1  ;;  %v570_v8 = vmul.f32 1.442695, %v521_v2  ;;  %v1643_v9 = vadd.f32 %v946_v5, %v1624_v56  ;;  %v1646_v10 = vadd.f32 %v970_v6, %v1624_v56  ;;  %v355_v11 = vpop.f32.mrb[3].mxu0  ;;  %v435_v12 = vpop.f32.mrb[3].mxu1 }
 0x156   : > { %v536_v13 = vmul.f32 1.442695, %v504_v3  ;;  %v568_v14 = vmul.f32 1.442695, %v520_v4  ;;  %v1649_v15 = vadd.f32 %v1624_v56, %v355_v11  ;;  %v1652_v16 = vadd.f32 %v1624_v56, %v435_v12 }
 0x157   : > { %1114 = vpow2.f32 %v538_v7  ;;  %v507_v17 = vsub.f32 0.0, %v1643_v9  ;;  %v523_v18 = vsub.f32 0.0, %v1646_v10 }
 0x158   : > { %1116 = vpow2.f32 %v570_v8  ;;  %v506_v19 = vsub.f32 0.0, %v1649_v15  ;;  %v522_v20 = vsub.f32 0.0, %v1652_v16  ;;  %v949_v21 = vpop.f32.mrb[4].mxu0  ;;  %v973_v22 = vpop.f32.mrb[4].mxu1 }
 0x159   : > { %1118 = vpow2.f32 %v536_v13  ;;  %v542_v23 = vmul.f32 1.442695, %v507_v17  ;;  %v574_v24 = vmul.f32 1.442695, %v523_v18  ;;  %v1659_v25 = vadd.f32 %v949_v21, %v1624_v56  ;;  %v365_v26 = vpop.f32.mrb[5].mxu0  ;;  %v445_v27 = vpop.f32.mrb[5].mxu1 }
 0x15a   : > { %1120 = vpow2.f32 %v568_v14  ;;  %v540_v28 = vmul.f32 1.442695, %v506_v19  ;;  %v572_v29 = vmul.f32 1.442695, %v522_v20  ;;  %v1662_v30 = vadd.f32 %v973_v22, %v1624_v56 }
 0x15b   : > { %1122 = vpow2.f32 %v542_v23  ;;  %v509_v31 = vsub.f32 0.0, %v1659_v25  ;;  %v1666_v32 = vadd.f32 %v1624_v56, %v365_v26  ;;  %v1669_v33 = vadd.f32 %v1624_v56, %v445_v27 }
 0x15c   : > { %1124 = vpow2.f32 %v574_v24  ;;  %v525_v34 = vsub.f32 0.0, %v1662_v30  ;;  %v952_v35 = vpop.f32.mrb[6].mxu0  ;;  %v976_v36 = vpop.f32.mrb[6].mxu1 }
 0x15d   : > { %1126 = vpow2.f32 %v540_v28  ;;  %v546_v37 = vmul.f32 1.442695, %v509_v31  ;;  %v508_v38 = vsub.f32 0.0, %v1666_v32  ;;  %v524_v39 = vsub.f32 0.0, %v1669_v33  ;;  %v375_v40 = vpop.f32.mrb[7].mxu0  ;;  %v455_v41 = vpop.f32.mrb[7].mxu1 }
 0x15e   : > { %1128 = vpow2.f32 %v572_v29  ;;  %v578_v42 = vmul.f32 1.442695, %v525_v34  ;;  %v1675_v45 = vadd.f32 %v952_v35, %v1624_v56  ;;  %v1678_v49 = vadd.f32 %v976_v36, %v1624_v56 }
 0x15f   : > { %1130 = vpow2.f32 %v546_v37  ;;  %v544_v43 = vmul.f32 1.442695, %v508_v38  ;;  %v576_v44 = vmul.f32 1.442695, %v524_v39  ;;  %v1681_v57 = vadd.f32 %v1624_v56, %v375_v40 }
 0x160   : > { %1132 = vpow2.f32 %v578_v42  ;;  %v955_v46 = vpop.f32.mrb[8].mxu0  ;;  %v979_v47 = vpop.f32.mrb[8].mxu1  ;;  %v511_v62 = vsub.f32 0.0, %v1675_v45  ;;  %v527_v5 = vsub.f32 0.0, %v1678_v49  ;;  %v1686_v6 = vadd.f32 %v1624_v56, %v455_v41 }
 0x161   : > { %v1115_v48 = vpop.eup %1114  ;;  %1134 = vpow2.f32 %v544_v43  ;;  %v385_v50 = vpop.f32.mrb[9].mxu0  ;;  %v1689_v12 = vadd.f32 %v955_v46, %v1624_v56  ;;  %v510_v18 = vsub.f32 0.0, %v1681_v57  ;;  %v1693_v22 = vadd.f32 %v979_v47, %v1624_v56 }
 0x162   : > { %v465_v51 = vpop.f32.mrb[9].mxu1  ;;  %v1117_v52 = vpop.eup %1116  ;;  %v601_v53 = vadd.f32 1.0, %v1115_v48  ;;  %1136 = vpow2.f32 %v576_v44  ;;  %v550_v21 = vmul.f32 1.442695, %v511_v62  ;;  %v582_v28 = vmul.f32 1.442695, %v527_v5 }
 0x163   : > { %v1119_v54 = vpop.eup %1118  ;;  %v617_v55 = vadd.f32 1.0, %v1117_v52  ;;  %v526_v29 = vsub.f32 0.0, %v1686_v6  ;;  %v513_v37 = vsub.f32 0.0, %v1689_v12  ;;  %v1704_v38 = vadd.f32 %v1624_v56, %v385_v50 }
 0x164   : > { %v1121_v58 = vpop.eup %1120  ;;  %1138 = vrcp.f32 %v601_v53  ;;  %v600_v61 = vadd.f32 1.0, %v1119_v54  ;;  %v958_v1 = vpop.f32.mrb[10].mxu0  ;;  %v548_v41 = vmul.f32 1.442695, %v510_v18  ;;  %v1707_v42 = vadd.f32 %v1624_v56, %v465_v51 }
 0x165   : > { %v982_v2 = vpop.f32.mrb[10].mxu1  ;;  %v1123_v3 = vpop.eup %1122  ;;  %1140 = vrcp.f32 %v617_v55  ;;  %v616_v4 = vadd.f32 1.0, %v1121_v58  ;;  %v529_v46 = vsub.f32 0.0, %v1693_v22  ;;  %v1711_v47 = vadd.f32 %v958_v1, %v1624_v56 }
 0x166   : > { %v395_v7 = vpop.f32.mrb[11].mxu0  ;;  %v1125_v8 = vpop.eup %1124  ;;  %1142 = vrcp.f32 %v600_v61  ;;  %v603_v11 = vadd.f32 1.0, %v1123_v3  ;;  %v580_v53 = vmul.f32 1.442695, %v526_v29  ;;  %v1718_v54 = vadd.f32 %v982_v2, %v1624_v56 }
 0x167   : > { %v475_v13 = vpop.f32.mrb[11].mxu1  ;;  %v1127_v14 = vpop.eup %1126  ;;  %1144 = vrcp.f32 %v616_v4  ;;  %v619_v17 = vadd.f32 1.0, %v1125_v8  ;;  %v554_v61 = vmul.f32 1.442695, %v513_v37  ;;  %v512_v62 = vsub.f32 0.0, %v1704_v38 }
 0x168   : > { %v1129_v19 = vpop.eup %1128  ;;  %1146 = vrcp.f32 %v603_v11  ;;  %v602_v20 = vadd.f32 1.0, %v1127_v14  ;;  %v961_v23 = vpop.f32.mrb[12].mxu0  ;;  %v1726_v1 = vadd.f32 %v1624_v56, %v395_v7  ;;  %v528_v2 = vsub.f32 0.0, %v1707_v42 }
 0x169   : > { %v1695_v24 = vpop.f32.mrb[12].mxu1  ;;  %v1131_v26 = vpop.eup %1130  ;;  %1148 = vrcp.f32 %v619_v17  ;;  %v618_v27 = vadd.f32 1.0, %v1129_v19  ;;  %v1731_v5 = vadd.f32 %v1624_v56, %v475_v13  ;;  %v515_v14 = vsub.f32 0.0, %v1711_v47 }
 0x16a   : > { %v1698_v31 = vpop.f32.mrb[13].mxu0  ;;  %v1700_v34 = vpop.f32.mrb[13].mxu1  ;;  %1150 = vrcp.f32 %v602_v20  ;;  %v605_v36 = vadd.f32 1.0, %v1131_v26  ;;  %v1736_v17 = vadd.f32 %v961_v23, %v1624_v56  ;;  %v586_v13 = vmul.f32 1.442695, %v529_v46 }
 0x16b   : > { %v1133_v35 = vpop.eup %1132  ;;  %1152 = vrcp.f32 %v618_v27  ;;  %v552_v20 = vmul.f32 1.442695, %v512_v62  ;;  %v530_v27 = vsub.f32 0.0, %v1731_v5 }
 0x16c   : > { %v1135_v39 = vpop.eup %1134  ;;  %v621_v40 = vadd.f32 1.0, %v1133_v35  ;;  %1154 = vrcp.f32 %v605_v36  ;;  %v1713_v48 = vpop.f32.mrb[14].mxu0  ;;  %v517_v35 = vsub.f32 0.0, %v1736_v17 }
 0x16d   : > { %v1137_v43 = vpop.eup %1136  ;;  %v604_v44 = vadd.f32 1.0, %v1135_v39  ;;  %v1715_v52 = vpop.f32.mrb[14].mxu1 }
 0x16e   : > { %1156 = vrcp.f32 %v621_v40  ;;  %v620_v50 = vadd.f32 1.0, %v1137_v43  ;;  %v1720_v51 = vpop.f32.mrb[15].mxu0  ;;  %v1722_v55 = vpop.f32.mrb[15].mxu1 }
 0x16f   : > { %v1139_v58 = vpop.eup %1138  ;;  %1158 = vrcp.f32 %v604_v44  ;;  %v588_v44 = vmul.f32 1.442695, %v530_v27  ;;  %v1792_v27 = vadd.f32 %v1624_v56, %v1720_v51 }
 0x170   : > { %v1141_v3 = vpop.eup %1140  ;;  %v665_v4 = vmul.f32 %v1139_v58, %v1627_v59  ;;  %1160 = vrcp.f32 %v620_v50  ;;  %v562_v50 = vmul.f32 1.442695, %v517_v35 }
 0x171   : > { %v1143_v8 = vpop.eup %1142  ;;  %v681_v11 = vmul.f32 %v1141_v3, %v1630_v60  ;;  %1162 = vpow2.f32 %v550_v21  ;;  %v531_v60 = vsub.f32 0.0, %v1718_v54  ;;  %v514_v21 = vsub.f32 0.0, %v1726_v1 }
 0x172   : > { %v1145_v7 = vpop.eup %1144  ;;  %697 = vst [vmem:[%s1740_s24 + $0x8] sm:$0xff] %v665_v4  ;;  %v664_v59 = vmul.f32 %v1143_v8, %v1633_v63  ;;  %1164 = vpow2.f32 %v582_v28  ;;  %v584_v63 = vmul.f32 1.442695, %v528_v2 }
 0x173   : > { %v1147_v18 = vpop.eup %1146  ;;  %713 = vst [vmem:[%s1740_s24 + $0x88] sm:$0xff] %v681_v11  ;;  %v680_v19 = vmul.f32 %v1145_v7, %v1636_v0  ;;  %1166 = vpow2.f32 %v548_v41  ;;  %v558_v0 = vmul.f32 1.442695, %v515_v14  ;;  %v556_v41 = vmul.f32 1.442695, %v514_v21 }
 0x174   : > { %v1149_v23 = vpop.eup %1148  ;;  %696 = vst [vmem:[%s1740_s24] sm:$0xff] %v664_v59  ;;  %v667_v26 = vmul.f32 %v1147_v18, %v1643_v9  ;;  %1168 = vpow2.f32 %v580_v53  ;;  %v590_v9 = vmul.f32 1.442695, %v531_v60  ;;  %v1770_v11 = vadd.f32 %v1695_v24, %v1624_v56 }
 0x175   : > { %v1151_v28 = vpop.eup %1150  ;;  %712 = vst [vmem:[%s1740_s24 + $0x80] sm:$0xff] %v680_v19  ;;  %v683_v29 = vmul.f32 %v1149_v23, %v1646_v10  ;;  %1170 = vpow2.f32 %v554_v61  ;;  %v1774_v7 = vadd.f32 %v1624_v56, %v1698_v31  ;;  %v1778_v60 = vadd.f32 %v1624_v56, %v1700_v34 }
 0x176   : > { %v1153_v36 = vpop.eup %1152  ;;  %699 = vst [vmem:[%s1740_s24 + $0x18] sm:$0xff] %v667_v26  ;;  %v666_v37 = vmul.f32 %v1151_v28, %v1649_v15  ;;  %1172 = vpow2.f32 %v586_v13  ;;  %v1782_v24 = vadd.f32 %v1713_v48, %v1624_v56  ;;  %v533_v31 = vsub.f32 0.0, %v1770_v11 }
 0x177   : > { %v1155_v39 = vpop.eup %1154  ;;  %715 = vst [vmem:[%s1740_s24 + $0x98] sm:$0xff] %v683_v29  ;;  %v682_v40 = vmul.f32 %v1153_v36, %v1652_v16  ;;  %1174 = vpow2.f32 %v552_v20  ;;  %v1787_v23 = vadd.f32 %v1715_v52, %v1624_v56  ;;  %v532_v29 = vsub.f32 0.0, %v1778_v60 }
 0x178   : > { %v1157_v10 = vpop.eup %1156  ;;  %698 = vst [vmem:[%s1740_s24 + $0x10] sm:$0xff] %v666_v37  ;;  %v669_v43 = vmul.f32 %v1155_v39, %v1659_v25  ;;  %1176 = vpow2.f32 %v584_v63  ;;  %v516_v63 = vsub.f32 0.0, %v1774_v7  ;;  %v519_v36 = vsub.f32 0.0, %v1782_v24 }
 0x179   : > { %v1159_v46 = vpop.eup %1158  ;;  %714 = vst [vmem:[%s1740_s24 + $0x90] sm:$0xff] %v682_v40  ;;  %v685_v15 = vmul.f32 %v1157_v10, %v1662_v30  ;;  %1178 = vpow2.f32 %v558_v0  ;;  %v1797_v0 = vadd.f32 %v1624_v56, %v1722_v55  ;;  %v594_v39 = vmul.f32 1.442695, %v533_v31 }
 0x17a   : > { %v1161_v53 = vpop.eup %1160  ;;  %701 = vst [vmem:[%s1740_s24 + $0x28] sm:$0xff] %v669_v43  ;;  %v668_v16 = vmul.f32 %v1159_v46, %v1666_v32  ;;  %1180 = vpow2.f32 %v590_v9  ;;  %v535_v51 = vsub.f32 0.0, %v1787_v23  ;;  %v560_v10 = vmul.f32 1.442695, %v516_v63 }
 0x17b   : > { %v1163_v58 = vpop.eup %1162  ;;  %717 = vst [vmem:[%s1740_s24 + $0xa8] sm:$0xff] %v685_v15  ;;  %v684_v61 = vmul.f32 %v1161_v53, %v1669_v33  ;;  %1182 = vpow2.f32 %v556_v41  ;;  %v518_v43 = vsub.f32 0.0, %v1792_v27  ;;  %v534_v46 = vsub.f32 0.0, %v1797_v0 }
 0x17c   : > { %v1165_v25 = vpop.eup %1164  ;;  %700 = vst [vmem:[%s1740_s24 + $0x20] sm:$0xff] %v668_v16  ;;  %v607_v62 = vadd.f32 1.0, %v1163_v58  ;;  %1184 = vpow2.f32 %v588_v44  ;;  %v592_v44 = vmul.f32 1.442695, %v532_v29  ;;  %v566_v53 = vmul.f32 1.442695, %v519_v36 }
 0x17d   : > { %v1167_v3 = vpop.eup %1166  ;;  %716 = vst [vmem:[%s1740_s24 + $0xa0] sm:$0xff] %v684_v61  ;;  %v623_v30 = vadd.f32 1.0, %v1165_v25  ;;  %1186 = vpow2.f32 %v562_v50  ;;  %v598_v61 = vmul.f32 1.442695, %v535_v51 }
 0x17e   : > { %v1169_v4 = vpop.eup %1168  ;;  %1188 = vrcp.f32 %v607_v62  ;;  %v606_v2 = vadd.f32 1.0, %v1167_v3  ;;  %v564_v62 = vmul.f32 1.442695, %v518_v43 }
 0x17f   : > { %v1171_v8 = vpop.eup %1170  ;;  %1190 = vrcp.f32 %v623_v30  ;;  %v622_v32 = vadd.f32 1.0, %v1169_v4  ;;  %v596_v30 = vmul.f32 1.442695, %v534_v46 }
 0x180   : > { %v1173_v33 = vpop.eup %1172  ;;  %1192 = vrcp.f32 %v606_v2  ;;  %v609_v14 = vadd.f32 1.0, %v1171_v8 }
 0x181   : > { %v1175_v59 = vpop.eup %1174  ;;  %1194 = vrcp.f32 %v622_v32  ;;  %v625_v13 = vadd.f32 1.0, %v1173_v33 }
 0x182   : > { %v1177_v18 = vpop.eup %1176  ;;  %1196 = vrcp.f32 %v609_v14  ;;  %v608_v19 = vadd.f32 1.0, %v1175_v59 }
 0x183   : > { %v1179_v20 = vpop.eup %1178  ;;  %1198 = vrcp.f32 %v625_v13  ;;  %v624_v21 = vadd.f32 1.0, %v1177_v18 }
 0x184   : > { %v1181_v26 = vpop.eup %1180  ;;  %1200 = vrcp.f32 %v608_v19  ;;  %v611_v34 = vadd.f32 1.0, %v1179_v20 }
 0x185   : > { %v1183_v48 = vpop.eup %1182  ;;  %1202 = vrcp.f32 %v624_v21  ;;  %v627_v28 = vadd.f32 1.0, %v1181_v26 }
 0x186   : > { %v1185_v52 = vpop.eup %1184  ;;  %1204 = vrcp.f32 %v611_v34  ;;  %v610_v35 = vadd.f32 1.0, %v1183_v48 }
 0x187   : > { %v1187_v37 = vpop.eup %1186  ;;  %1206 = vrcp.f32 %v627_v28  ;;  %v626_v9 = vadd.f32 1.0, %v1185_v52 }
 0x188   : > { %v1189_v40 = vpop.eup %1188  ;;  %1208 = vrcp.f32 %v610_v35  ;;  %v613_v41 = vadd.f32 1.0, %v1187_v37 }
 0x189   : > { %v1191_v56 = vpop.eup %1190  ;;  %v671_v55 = vmul.f32 %v1189_v40, %v1675_v45  ;;  %1210 = vrcp.f32 %v626_v9 }
 0x18a   : > { %v1193_v15 = vpop.eup %1192  ;;  %v687_v50 = vmul.f32 %v1191_v56, %v1678_v49  ;;  %1212 = vrcp.f32 %v613_v41 }
 0x18b   : > { %v1195_v16 = vpop.eup %1194  ;;  %703 = vst [vmem:[%s1740_s24 + $0x38] sm:$0xff] %v671_v55  ;;  %v670_v58 = vmul.f32 %v1193_v15, %v1681_v57  ;;  %1214 = vpow2.f32 %v594_v39 }
 0x18c   : > { %v1197_v25 = vpop.eup %1196  ;;  %719 = vst [vmem:[%s1740_s24 + $0xb8] sm:$0xff] %v687_v50  ;;  %v686_v45 = vmul.f32 %v1195_v16, %v1686_v6  ;;  %1216 = vpow2.f32 %v560_v10 }
 0x18d   : > { %v1199_v3 = vpop.eup %1198  ;;  %702 = vst [vmem:[%s1740_s24 + $0x30] sm:$0xff] %v670_v58  ;;  %v673_v49 = vmul.f32 %v1197_v25, %v1689_v12  ;;  %1218 = vpow2.f32 %v592_v44 }
 0x18e   : > { %v1201_v4 = vpop.eup %1200  ;;  %718 = vst [vmem:[%s1740_s24 + $0xb0] sm:$0xff] %v686_v45  ;;  %v689_v57 = vmul.f32 %v1199_v3, %v1693_v22  ;;  %1220 = vpow2.f32 %v566_v53 }
 0x18f   : > { %v1203_v2 = vpop.eup %1202  ;;  %705 = vst [vmem:[%s1740_s24 + $0x48] sm:$0xff] %v673_v49  ;;  %v672_v6 = vmul.f32 %v1201_v4, %v1704_v38  ;;  %1222 = vpow2.f32 %v598_v61 }
 0x190   : > { %v1205_v8 = vpop.eup %1204  ;;  %721 = vst [vmem:[%s1740_s24 + $0xc8] sm:$0xff] %v689_v57  ;;  %v688_v12 = vmul.f32 %v1203_v2, %v1707_v42  ;;  %1224 = vpow2.f32 %v564_v62 }
 0x191   : > { %v1207_v32 = vpop.eup %1206  ;;  %704 = vst [vmem:[%s1740_s24 + $0x40] sm:$0xff] %v672_v6  ;;  %v675_v33 = vmul.f32 %v1205_v8, %v1711_v47  ;;  %1226 = vpow2.f32 %v596_v30 }
 0x192   : > { %v1209_v22 = vpop.eup %1208  ;;  %720 = vst [vmem:[%s1740_s24 + $0xc0] sm:$0xff] %v688_v12  ;;  %v691_v14 = vmul.f32 %v1207_v32, %v1718_v54 }
 0x193   : > { %v1211_v38 = vpop.eup %1210  ;;  %707 = vst [vmem:[%s1740_s24 + $0x58] sm:$0xff] %v675_v33  ;;  %v674_v59 = vmul.f32 %v1209_v22, %v1726_v1 }
 0x194   : > { %v1213_v13 = vpop.eup %1212  ;;  %723 = vst [vmem:[%s1740_s24 + $0xd8] sm:$0xff] %v691_v14  ;;  %v690_v42 = vmul.f32 %v1211_v38, %v1731_v5 }
 0x195   : > { %v1215_v18 = vpop.eup %1214  ;;  %706 = vst [vmem:[%s1740_s24 + $0x50] sm:$0xff] %v674_v59  ;;  %v677_v19 = vmul.f32 %v1213_v13, %v1736_v17 }
 0x196   : > { %v1217_v20 = vpop.eup %1216  ;;  %722 = vst [vmem:[%s1740_s24 + $0xd0] sm:$0xff] %v690_v42  ;;  %v629_v47 = vadd.f32 1.0, %v1215_v18 }
 0x197   : > { %v1219_v21 = vpop.eup %1218  ;;  %709 = vst [vmem:[%s1740_s24 + $0x68] sm:$0xff] %v677_v19  ;;  %v612_v31 = vadd.f32 1.0, %v1217_v20 }
 0x198   : > { %v1221_v26 = vpop.eup %1220  ;;  %1228 = vrcp.f32 %v629_v47  ;;  %v628_v54 = vadd.f32 1.0, %v1219_v21 }
 0x199   : > { %v1223_v34 = vpop.eup %1222  ;;  %1230 = vrcp.f32 %v612_v31  ;;  %v615_v1 = vadd.f32 1.0, %v1221_v26 }
 0x19a   : > { %v1225_v63 = vpop.eup %1224  ;;  %1232 = vrcp.f32 %v628_v54  ;;  %v631_v5 = vadd.f32 1.0, %v1223_v34 }
 0x19b   : > { %v1227_v48 = vpop.eup %1226  ;;  %1234 = vrcp.f32 %v615_v1  ;;  %v614_v17 = vadd.f32 1.0, %v1225_v63 }
 0x19c   : > { %1236 = vrcp.f32 %v631_v5  ;;  %v630_v28 = vadd.f32 1.0, %v1227_v48 }
 0x19d   : > { %1238 = vrcp.f32 %v614_v17 }
 0x19e   : > { %1240 = vrcp.f32 %v630_v28 }
 0x1a2   : > { %v1229_v29 = vpop.eup %1228 }
 0x1a3   : > { %v1231_v52 = vpop.eup %1230  ;;  %v693_v35 = vmul.f32 %v1229_v29, %v1770_v11 }
 0x1a4   : > { %v1233_v36 = vpop.eup %1232  ;;  %v676_v37 = vmul.f32 %v1231_v52, %v1774_v7 }
 0x1a5   : > { %v1235_v9 = vpop.eup %1234  ;;  %725 = vst [vmem:[%s1740_s24 + $0xe8] sm:$0xff] %v693_v35  ;;  %v692_v39 = vmul.f32 %v1233_v36, %v1778_v60 }
 0x1a6   : > { %v1237_v51 = vpop.eup %1236  ;;  %708 = vst [vmem:[%s1740_s24 + $0x60] sm:$0xff] %v676_v37  ;;  %v679_v40 = vmul.f32 %v1235_v9, %v1782_v24 }
 0x1a7   : > { %v1239_v41 = vpop.eup %1238  ;;  %724 = vst [vmem:[%s1740_s24 + $0xe0] sm:$0xff] %v692_v39  ;;  %v695_v11 = vmul.f32 %v1237_v51, %v1787_v23 }
 0x1a8   : > { %v1241_v7 = vpop.eup %1240  ;;  %711 = vst [vmem:[%s1740_s24 + $0x78] sm:$0xff] %v679_v40  ;;  %v678_v10 = vmul.f32 %v1239_v41, %v1792_v27 }
 0x1a9   : > { %727 = vst [vmem:[%s1740_s24 + $0xf8] sm:$0xff] %v695_v11  ;;  %v694_v60 = vmul.f32 %v1241_v7, %v1797_v0 }
 0x1aa   : > { %710 = vst [vmem:[%s1740_s24 + $0x70] sm:$0xff] %v678_v10 }
 0x1ab   : > { %726 = vst [vmem:[%s1740_s24 + $0xf0] sm:$0xff] %v694_v60 }
 0x1ac   : > { %1313 = shalt.err (!%p1310_p5)
}
 0x1ad   : > { %s1314_s6 = scalar_lea.hbm %s1844_s15, 4096  ;;  %s1318_s19 = scalar_lea.hbm %s1902_s3, 8192 }
 0x1ae   : > { %p1315_p9 = scmp.ne.s32.totalorder %s1844_s15, %s1314_s6  ;;  %p1319_p3 = scmp.lt.u32.totalorder %s1844_s15, %s1902_s3 }
 0x1af   : > { %p1320_p7 = scmp.lt.u32.totalorder %s1318_s19, %s1314_s6  ;;  %p1322_p4 = scmp.lt.u32.totalorder %s1314_s6, %s1844_s15 }
 0x1b0   : > { %p1316_p1 = pnand %p1315_p9, %p1514_p10 }
 0x1b1   : > { %p1321_p13 = por %p1320_p7, %p1319_p3 }
 0x1b2   : > { %p1317_p2 = pneg %p1316_p1 }
 0x1b3   : > { %p1323_p6 = por %p1322_p4, %p1321_p13 }
 0x1b5   : > { %p1324_p8 = pnand %p1323_p6, %p1317_p2 }
 0x1b7   : > { %1327 = shalt.err (!%p1324_p8)
}
 0x1b8   : > { %s1393_s24 = smov 128   ;;  %s1394_s10 = smov 8  }
 0x1b9   : > { %1043 = dma.vmem_to_hbm [thread:$0]  (%p1514_p10), %s1846_s11, 4096, %s1844_s15, %s729_s25, %s1393_s24, %s1393_s24, %s1394_s10  }
 0x1ba PF: > { %s759_s9 = sand.u32 1, %s1366_s12   ;;  %p1920_p12 = scmp.ne.s32.totalorder %s1910_s23, 0 }
 0x1bb   : > { %p1921_p11 = scmp.ge.s32.totalorder %s1386_s17, 2  ;;  %s760_s18 = scalar_lea.sflag [#allocation4], %s759_s9 }
 0x1bd   : > { %p1054_p0 = pnand %p1921_p11, %p1920_p12 }
 0x1bf   : > { %1361 = dma.done.wait (!%p1054_p0), %s760_s18, 4096  }
 0x1c0   : > { %1363 = vsyncadd (!%p1054_p0), %s760_s18, 4294963200  ;;  %s20_s17 = sadd.s32 1, %s1386_s17   ;;  %s1922_s12 = smov %s1370_s13 }
 0x1c1   : > { %p17_p5 = scmp.ge.s32.totalorder %s20_s17, 4   ;;  %s1923_s13 = smov %s1374_s14 }
 0x1c2   : > { %s1924_s14 = smov %s1523_s5  ;;  %s1925_s15 = smov %s1382_s16 }
 0x1c3   : > { %s1926_s16 = smov %s1928_s28  ;;  %19 = sbr.rel (!%p17_p5) target bundleno = 7 (0x7), region = 81 }
 0x1ca   :  { %765 = vsyncpa [#allocation3], 1 }
 0x1cb   :  { %767 = vsyncpa [#allocation3 + $0x1], 1 }
 0x1cc   :  { %768 = vsyncpa [#allocation6], 1 }
 0x1cd   :  { %769 = vsyncpa [#allocation4], 1 }
 0x1ce   :  { %771 = vsyncpa [#allocation4 + $0x1], 1 }

</bundles_post_ra>
